<compile_context>
chip_gen: v7x
topology: tpu7x:2x2x1
jax: 0.10.0
libtpu: 0.0.40
codegen_flags: <defaults>
</compile_context>

<pallas_src>
import functools

import jax
import jax.numpy as jnp
from jax.experimental import pallas as pl
from jax.experimental.pallas import tpu as pltpu


def _mha_kernel(*refs, heads, causal, has_mask, q_tile, k_tile, compute_dtype):
    if has_mask:
        (q_ref, k_ref, v_ref, mask_ref, wfc_ref, bfc_ref, out_ref,
         acc_sc, m_sc, l_sc) = refs
    else:
        (q_ref, k_ref, v_ref, wfc_ref, bfc_ref, out_ref,
         acc_sc, m_sc, l_sc) = refs
        mask_ref = None

    ki = pl.program_id(2)
    cd = compute_dtype

    @pl.when(ki == 0)
    def _init():
        m_sc[...] = jnp.full_like(m_sc, -jnp.inf)
        l_sc[...] = jnp.zeros_like(l_sc)
        acc_sc[...] = jnp.zeros_like(acc_sc)

    q = q_ref[...]                         # (H, tq, d) compute dtype, pre-scaled
    k = k_ref[...]                         # (H, tk, d)
    v = v_ref[...]                         # (H, tk, d)

    # Head-batched QK^T on the MXU, f32 accumulation.
    s = jnp.einsum("hqd,hkd->hqk", q, k,
                   preferred_element_type=jnp.float32)           # (H, tq, tk)

    if causal:
        # Generate the causal mask in-kernel: no (N, Lq, Lk) tensor ever hits HBM.
        q_off = pl.program_id(1) * q_tile
        k_off = ki * k_tile
        rows = jax.lax.broadcasted_iota(jnp.int32, (q_tile, k_tile), 0) + q_off
        cols = jax.lax.broadcasted_iota(jnp.int32, (q_tile, k_tile), 1) + k_off
        keep = rows >= cols
        s = jnp.where(keep[None, :, :], s, jnp.float32(-1e20))
    elif mask_ref is not None:
        keep = mask_ref[...] != 0                                # (tq, tk)
        s = jnp.where(keep[None, :, :], s, jnp.float32(-1e20))

    # Online-softmax update (statistics kept in f32).
    m_prev = m_sc[...]                                           # (H, tq, 1)
    m_new = jnp.maximum(m_prev, jnp.max(s, axis=-1, keepdims=True))
    alpha = jnp.exp(m_prev - m_new)
    p = jnp.exp(s - m_new)                                       # (H, tq, tk) f32
    l_sc[...] = alpha * l_sc[...] + jnp.sum(p, axis=-1, keepdims=True)
    acc_sc[...] = alpha * acc_sc[...] + jnp.einsum(
        "hqk,hkd->hqd", p.astype(cd), v, preferred_element_type=jnp.float32)
    m_sc[...] = m_new

    @pl.when(ki == pl.num_programs(2) - 1)
    def _finalize():
        # Single broadcast reciprocal multiply (EUP slot), then fc_out:
        # sum_h acc_h @ Wfc_h accumulated in registers, one lane-dense store.
        hc = acc_sc[...] * pl.reciprocal(l_sc[...], approx=True)  # (H, tq, d)
        res = jnp.zeros(out_ref.shape, jnp.float32)               # (tq, E)
        for h in range(heads):
            res = res + jnp.dot(hc[h].astype(cd), wfc_ref[h],
                                preferred_element_type=jnp.float32)
        out_ref[...] = (res + bfc_ref[...]).astype(out_ref.dtype)


def _pick_tile(length, cap, unit):
    """Largest divisor of `length` that is <= cap and a multiple of `unit`
    (falls back to the full length, which is always legal)."""
    if length <= cap:
        return length
    t = (cap // unit) * unit
    while t >= unit:
        if length % t == 0:
            return t
        t -= unit
    return length


def _tpu_vmem_bytes():
    try:
        return int(pltpu.get_tpu_info().vmem_capacity_bytes)
    except Exception:
        return 64 * 1024 * 1024


def self_attention(values, keys, query, mask, params, *, embed_size, heads,
                   causal=False, q_tile=None, k_tile=None,
                   compute_dtype=jnp.bfloat16):
    """values/keys/query: (N, L, embed_size) f32; mask: (N, Lq, Lk) int or None.

    If causal=True the lower-triangular mask is generated inside the kernel
    (pass mask=None); any explicit mask is streamed as bf16 0/1."""
    N, Lk, E = keys.shape
    Lq = query.shape[1]
    d = embed_size // heads
    assert E == embed_size and d * heads == embed_size
    assert values.shape[1] == Lk

    # Generation-aware VMEM budget / tile caps (v5e & v6e: 128 MiB physical,
    # v7x: 64 MiB physical).
    big_vmem = _tpu_vmem_bytes() >= 100 * 1024 * 1024
    vmem_limit = (96 if big_vmem else 48) * 1024 * 1024
    q_cap, k_cap = 256, (1024 if big_vmem else 512)

    if q_tile is None:
        q_tile = _pick_tile(Lq, q_cap, 16)     # 16-aligned for bf16 sublane pack
        if N == 1 and Lq // q_tile < 2:
            # v7x shards parallel grid axes over 2 TensorCores; make sure there
            # are >= 2 q-tiles when batch == 1.
            half = _pick_tile(Lq, max(16, Lq // 2), 16)
            if half < Lq:
                q_tile = half
    if k_tile is None:
        k_tile = _pick_tile(Lk, k_cap, 128)
    assert Lq % q_tile == 0 and Lk % k_tile == 0

    cd = compute_dtype
    inv_sqrt = 1.0 / (embed_size ** 0.5)

    # Hoisted projections (shared per-head Linear, y = x @ W^T), cast once,
    # head-major layout, 1/sqrt(E) folded into q.
    def project(x, w):                                    # (N,L,E) -> (N,H,L,d)
        n, l, _ = x.shape
        xh = x.reshape(n, l, heads, d)
        ph = jnp.einsum("nlhd,ed->nlhe", xh, w)           # == xh @ w.T
        return jnp.transpose(ph, (0, 2, 1, 3))

    q_p = (project(query, params["wq"]) * inv_sqrt).astype(cd)
    k_p = project(keys, params["wk"]).astype(cd)
    v_p = project(values, params["wv"]).astype(cd)

    wfc_r = params["wfc"].T.reshape(heads, d, embed_size).astype(cd)
    bias = params["bfc"].reshape(1, embed_size).astype(jnp.float32)

    has_mask = (mask is not None) and (not causal)

    grid = (N, Lq // q_tile, Lk // k_tile)

    in_specs = [
        pl.BlockSpec((None, heads, q_tile, d), lambda n, qi, ki: (n, 0, qi, 0)),
        pl.BlockSpec((None, heads, k_tile, d), lambda n, qi, ki: (n, 0, ki, 0)),
        pl.BlockSpec((None, heads, k_tile, d), lambda n, qi, ki: (n, 0, ki, 0)),
    ]
    inputs = [q_p, k_p, v_p]
    if has_mask:
        # bf16 0/1 mask: half the HBM traffic of an f32 additive bias, exact
        # masked_fill semantics in-kernel via jnp.where.
        inputs.append((mask != 0).astype(jnp.bfloat16))
        in_specs.append(
            pl.BlockSpec((None, q_tile, k_tile), lambda n, qi, ki: (n, qi, ki)))
    # fc_out weights/bias: constant index_map -> fetched once, stays resident.
    # TODO(synk): pipeline_mode=pl.Buffered(1) would drop their double buffer.
    in_specs += [
        pl.BlockSpec((heads, d, embed_size), lambda n, qi, ki: (0, 0, 0)),
        pl.BlockSpec((1, embed_size), lambda n, qi, ki: (0, 0)),
    ]
    inputs += [wfc_r, bias]

    kernel = functools.partial(
        _mha_kernel, heads=heads, causal=causal, has_mask=has_mask,
        q_tile=q_tile, k_tile=k_tile, compute_dtype=cd)

    return pl.pallas_call(
        kernel,
        out_shape=jax.ShapeDtypeStruct((N, Lq, embed_size), jnp.float32),
        grid_spec=pltpu.PrefetchScalarGridSpec(
            num_scalar_prefetch=0,
            grid=grid,
            in_specs=in_specs,
            out_specs=pl.BlockSpec((None, q_tile, embed_size),
                                   lambda n, qi, ki: (n, qi, 0)),
            scratch_shapes=[
                pltpu.VMEM((heads, q_tile, d), jnp.float32),   # attention acc
                pltpu.VMEM((heads, q_tile, 1), jnp.float32),   # running max m
                pltpu.VMEM((heads, q_tile, 1), jnp.float32),   # running sum l
            ],
        ),
        compiler_params=pltpu.CompilerParams(
            dimension_semantics=("parallel", "parallel", "arbitrary"),
            vmem_limit_bytes=vmem_limit),
    )(*inputs)


def self_attention_ref(values, keys, query, mask, params, *, embed_size, heads):
    """Pure-JAX reference mirroring the PyTorch forward exactly."""
    N, Lq, _ = query.shape
    Lk = keys.shape[1]
    d = embed_size // heads
    v = values.reshape(N, Lk, heads, d) @ params["wv"].T
    k = keys.reshape(N, Lk, heads, d) @ params["wk"].T
    q = query.reshape(N, Lq, heads, d) @ params["wq"].T
    energy = jnp.einsum("nqhd,nkhd->nhqk", q, k)
    if mask is not None:
        energy = jnp.where(mask[:, None, :, :] == 0, -1e20, energy)
    attn = jax.nn.softmax(energy / (embed_size ** 0.5), axis=3)
    out = jnp.einsum("nhql,nlhd->nqhd", attn, v).reshape(N, Lq, heads * d)
    return out @ params["wfc"].T + params["bfc"]


if __name__ == "__main__":
    N, L, embed_size, heads = 2, 8, 32, 2
    d = embed_size // heads

    key = jax.random.PRNGKey(0)
    kv, kk, kq, kwv, kwk, kwq, kwf, kbf = jax.random.split(key, 8)

    values = jax.random.normal(kv, (N, L, embed_size), jnp.float32)
    keys_x = jax.random.normal(kk, (N, L, embed_size), jnp.float32)
    query = jax.random.normal(kq, (N, L, embed_size), jnp.float32)

    # mask: lower-triangular (causal) per batch, broadcast over heads.
    mask = jnp.tril(jnp.ones((L, L), jnp.int32))[None].repeat(N, axis=0)

    params = {
        "wv": jax.random.normal(kwv, (d, d), jnp.float32) * 0.1,
        "wk": jax.random.normal(kwk, (d, d), jnp.float32) * 0.1,
        "wq": jax.random.normal(kwq, (d, d), jnp.float32) * 0.1,
        "wfc": jax.random.normal(kwf, (embed_size, heads * d), jnp.float32) * 0.1,
        "bfc": jax.random.normal(kbf, (embed_size,), jnp.float32) * 0.1,
    }

    ref_causal = self_attention_ref(values, keys_x, query, mask, params,
                                    embed_size=embed_size, heads=heads)
    ref_nomask = self_attention_ref(values, keys_x, query, None, params,
                                    embed_size=embed_size, heads=heads)

    # 1) causal mask generated in-kernel (no mask tensor touches HBM).
    out_causal = self_attention(values, keys_x, query, None, params,
                                embed_size=embed_size, heads=heads, causal=True)
    # 2) explicit mask streamed as bf16 0/1.
    out_masked = self_attention(values, keys_x, query, mask, params,
                                embed_size=embed_size, heads=heads)
    # 3) no mask at all (kernel variant without a mask input).
    out_nomask = self_attention(values, keys_x, query, None, params,
                                embed_size=embed_size, heads=heads)
    jax.block_until_ready((out_causal, out_masked, out_nomask))

    assert out_causal.shape == (N, L, embed_size)
    # Tolerance accounts for bf16 MXU operands, flash-style re-association and
    # the approx reciprocal in the epilogue.
    tol = dict(atol=2e-2, rtol=2e-2)
    assert jnp.allclose(out_causal, ref_causal, **tol), "causal path mismatch"
    assert jnp.allclose(out_masked, ref_causal, **tol), "masked path mismatch"
    assert jnp.allclose(out_nomask, ref_nomask, **tol), "unmasked path mismatch"

    print("KERNEL_OK")
</pallas_src>

<mosaic_0001>
module attributes {stable_mosaic.version = 11 : i64} {
  func.func @_mha_kernel(%arg0: i32, %arg1: i32, %arg2: i32, %arg3: memref<1x2x8x16xbf16, #tpu.memory_space<vmem>>, %arg4: memref<1x2x8x16xbf16, #tpu.memory_space<vmem>>, %arg5: memref<1x2x8x16xbf16, #tpu.memory_space<vmem>>, %arg6: memref<2x16x32xbf16, #tpu.memory_space<vmem>>, %arg7: memref<1x32xf32, #tpu.memory_space<vmem>>, %arg8: memref<1x8x32xf32, #tpu.memory_space<vmem>>, %arg9: memref<2x8x16xf32, #tpu.memory_space<vmem>>, %arg10: memref<2x8x1xf32, #tpu.memory_space<vmem>>, %arg11: memref<2x8x1xf32, #tpu.memory_space<vmem>>) attributes {dimension_semantics = [#tpu.dimension_semantics<parallel>, #tpu.dimension_semantics<parallel>, #tpu.dimension_semantics<arbitrary>], iteration_bounds = array<i64: 2, 1, 1>, scalar_prefetch = 0 : i64, scratch_operands = 3 : i64, tpu.core_type = #tpu.core_type<tc>, window_params = [{transform_indices = @transform_0, window_bounds = array<i64: 1, 2, 8, 16>}, {transform_indices = @transform_1, window_bounds = array<i64: 1, 2, 8, 16>}, {transform_indices = @transform_2, window_bounds = array<i64: 1, 2, 8, 16>}, {pipeline_mode = #tpu.pipeline_mode<synchronous>, transform_indices = @transform_3, window_bounds = array<i64: 2, 16, 32>}, {pipeline_mode = #tpu.pipeline_mode<synchronous>, transform_indices = @transform_4, window_bounds = array<i64: 1, 32>}, {transform_indices = @transform_5, window_bounds = array<i64: 1, 8, 32>}]} {
    %c0_i32 = arith.constant 0 : i32
    %0 = arith.cmpi eq, %arg2, %c0_i32 : i32
    %1 = arith.extui %0 : i1 to i32
    %c0_i32_0 = arith.constant 0 : i32
    %2 = arith.cmpi ne, %1, %c0_i32_0 : i32
    scf.if %2 {
      %cst_37 = arith.constant 0xFF800000 : f32
      %50 = vector.broadcast %cst_37 : f32 to vector<2x8x1xf32>
      %c0_38 = arith.constant 0 : index
      %c0_39 = arith.constant 0 : index
      %c0_40 = arith.constant 0 : index
      %51 = vector.load %arg10[%c0_38, %c0_39, %c0_40] : memref<2x8x1xf32, #tpu.memory_space<vmem>>, vector<2x8x1xf32>
      tpu.vector_store %arg10[%c0_38, %c0_39, %c0_40], %50 {strides = array<i32>} : memref<2x8x1xf32, #tpu.memory_space<vmem>>, vector<2x8x1xf32>,
      %cst_41 = arith.constant 0.000000e+00 : f32
      %52 = vector.broadcast %cst_41 : f32 to vector<2x8x1xf32>
      %c0_42 = arith.constant 0 : index
      %c0_43 = arith.constant 0 : index
      %c0_44 = arith.constant 0 : index
      %53 = vector.load %arg11[%c0_42, %c0_43, %c0_44] : memref<2x8x1xf32, #tpu.memory_space<vmem>>, vector<2x8x1xf32>
      tpu.vector_store %arg11[%c0_42, %c0_43, %c0_44], %52 {strides = array<i32>} : memref<2x8x1xf32, #tpu.memory_space<vmem>>, vector<2x8x1xf32>,
      %cst_45 = arith.constant 0.000000e+00 : f32
      %54 = vector.broadcast %cst_45 : f32 to vector<2x8x16xf32>
      %c0_46 = arith.constant 0 : index
      %c0_47 = arith.constant 0 : index
      %c0_48 = arith.constant 0 : index
      %55 = vector.load %arg9[%c0_46, %c0_47, %c0_48] : memref<2x8x16xf32, #tpu.memory_space<vmem>>, vector<2x8x16xf32>
      tpu.vector_store %arg9[%c0_46, %c0_47, %c0_48], %54 {strides = array<i32>} : memref<2x8x16xf32, #tpu.memory_space<vmem>>, vector<2x8x16xf32>,
    } else {
    }
    %c0 = arith.constant 0 : index
    %c0_1 = arith.constant 0 : index
    %c0_2 = arith.constant 0 : index
    %c0_3 = arith.constant 0 : index
    %3 = vector.load %arg3[%c0, %c0_1, %c0_2, %c0_3] : memref<1x2x8x16xbf16, #tpu.memory_space<vmem>>, vector<1x2x8x16xbf16>
    %4 = vector.shape_cast %3 : vector<1x2x8x16xbf16> to vector<2x8x16xbf16>
    %c0_4 = arith.constant 0 : index
    %c0_5 = arith.constant 0 : index
    %c0_6 = arith.constant 0 : index
    %c0_7 = arith.constant 0 : index
    %5 = vector.load %arg4[%c0_4, %c0_5, %c0_6, %c0_7] : memref<1x2x8x16xbf16, #tpu.memory_space<vmem>>, vector<1x2x8x16xbf16>
    %6 = vector.shape_cast %5 : vector<1x2x8x16xbf16> to vector<2x8x16xbf16>
    %c0_8 = arith.constant 0 : index
    %c0_9 = arith.constant 0 : index
    %c0_10 = arith.constant 0 : index
    %c0_11 = arith.constant 0 : index
    %7 = vector.load %arg5[%c0_8, %c0_9, %c0_10, %c0_11] : memref<1x2x8x16xbf16, #tpu.memory_space<vmem>>, vector<1x2x8x16xbf16>
    %8 = vector.shape_cast %7 : vector<1x2x8x16xbf16> to vector<2x8x16xbf16>
    "tpu.trace_start"() <{level = 10 : i32, message = "hqd,hkd->hqk"}> : () -> ()
    %cst = arith.constant dense<0.000000e+00> : vector<2x8x8xf32>
    %9 = tpu.matmul %4, %6, %cst {dimension_numbers = #tpu.dot_dimension_numbers<[2], [2], [1], [1], [0, 0, 0, 1, 1, 1], [0], [0]>} : vector<2x8x16xbf16>, vector<2x8x16xbf16>, vector<2x8x8xf32> -> vector<2x8x8xf32>
    "tpu.trace_stop"() : () -> ()
    %c8_i32 = arith.constant 8 : i32
    %10 = arith.muli %arg1, %c8_i32 : i32
    %c8_i32_12 = arith.constant 8 : i32
    %11 = arith.muli %arg2, %c8_i32_12 : i32
    %12 = tpu.iota {dimensions = array<i32: 0>} : vector<8x8xi32>
    %13 = vector.broadcast %10 : i32 to vector<8x8xi32>
    %14 = arith.addi %12, %13 : vector<8x8xi32>
    %15 = tpu.iota {dimensions = array<i32: 1>} : vector<8x8xi32>
    %16 = vector.broadcast %11 : i32 to vector<8x8xi32>
    %17 = arith.addi %15, %16 : vector<8x8xi32>
    %18 = arith.cmpi sge, %14, %17 : vector<8x8xi32>
    %19 = vector.shape_cast %18 : vector<8x8xi1> to vector<1x8x8xi1>
    %cst_13 = arith.constant -1.000000e+20 : f32
    %20 = vector.shape_cast %19 : vector<1x8x8xi1> to vector<1x8x8xi1>
    %21 = vector.broadcast %20 : vector<1x8x8xi1> to vector<2x8x8xi1>
    %22 = vector.broadcast %cst_13 : f32 to vector<2x8x8xf32>
    %23 = arith.select %21, %9, %22 : vector<2x8x8xi1>, vector<2x8x8xf32>
    %c0_14 = arith.constant 0 : index
    %c0_15 = arith.constant 0 : index
    %c0_16 = arith.constant 0 : index
    %24 = vector.load %arg10[%c0_14, %c0_15, %c0_16] : memref<2x8x1xf32, #tpu.memory_space<vmem>>, vector<2x8x1xf32>
    %cst_17 = arith.constant dense<0xFF800000> : vector<2x8xf32>
    %25 = vector.multi_reduction <maximumf>, %23, %cst_17 [2] : vector<2x8x8xf32> to vector<2x8xf32>
    %26 = vector.shape_cast %25 : vector<2x8xf32> to vector<2x8x1xf32>
    %27 = arith.maximumf %24, %26 : vector<2x8x1xf32>
    %28 = arith.subf %24, %27 : vector<2x8x1xf32>
    %29 = math.exp %28 : vector<2x8x1xf32>
    %30 = vector.broadcast %27 : vector<2x8x1xf32> to vector<2x8x8xf32>
    %31 = arith.subf %23, %30 : vector<2x8x8xf32>
    %32 = math.exp %31 : vector<2x8x8xf32>
    %c0_18 = arith.constant 0 : index
    %c0_19 = arith.constant 0 : index
    %c0_20 = arith.constant 0 : index
    %33 = vector.load %arg11[%c0_18, %c0_19, %c0_20] : memref<2x8x1xf32, #tpu.memory_space<vmem>>, vector<2x8x1xf32>
    %34 = arith.mulf %29, %33 : vector<2x8x1xf32>
    %cst_21 = arith.constant dense<0.000000e+00> : vector<2x8xf32>
    %35 = vector.multi_reduction <add>, %32, %cst_21 [2] : vector<2x8x8xf32> to vector<2x8xf32>
    %36 = vector.shape_cast %35 : vector<2x8xf32> to vector<2x8x1xf32>
    %37 = arith.addf %34, %36 : vector<2x8x1xf32>
    %c0_22 = arith.constant 0 : index
    %c0_23 = arith.constant 0 : index
    %c0_24 = arith.constant 0 : index
    %38 = vector.load %arg11[%c0_22, %c0_23, %c0_24] : memref<2x8x1xf32, #tpu.memory_space<vmem>>, vector<2x8x1xf32>
    tpu.vector_store %arg11[%c0_22, %c0_23, %c0_24], %37 {strides = array<i32>} : memref<2x8x1xf32, #tpu.memory_space<vmem>>, vector<2x8x1xf32>,
    %c0_25 = arith.constant 0 : index
    %c0_26 = arith.constant 0 : index
    %c0_27 = arith.constant 0 : index
    %39 = vector.load %arg9[%c0_25, %c0_26, %c0_27] : memref<2x8x16xf32, #tpu.memory_space<vmem>>, vector<2x8x16xf32>
    %40 = vector.broadcast %29 : vector<2x8x1xf32> to vector<2x8x16xf32>
    %41 = arith.mulf %40, %39 : vector<2x8x16xf32>
    %42 = arith.truncf %32 : vector<2x8x8xf32> to vector<2x8x8xbf16>
    "tpu.trace_start"() <{level = 10 : i32, message = "hqk,hkd->hqd"}> : () -> ()
    %cst_28 = arith.constant dense<0.000000e+00> : vector<2x8x16xf32>
    %43 = tpu.matmul %42, %8, %cst_28 {dimension_numbers = #tpu.dot_dimension_numbers<[2], [1], [1], [2], [0, 0, 0, 1, 1, 2], [0], [0]>} : vector<2x8x8xbf16>, vector<2x8x16xbf16>, vector<2x8x16xf32> -> vector<2x8x16xf32>
    "tpu.trace_stop"() : () -> ()
    %44 = arith.addf %41, %43 : vector<2x8x16xf32>
    %c0_29 = arith.constant 0 : index
    %c0_30 = arith.constant 0 : index
    %c0_31 = arith.constant 0 : index
    %45 = vector.load %arg9[%c0_29, %c0_30, %c0_31] : memref<2x8x16xf32, #tpu.memory_space<vmem>>, vector<2x8x16xf32>
    tpu.vector_store %arg9[%c0_29, %c0_30, %c0_31], %44 {strides = array<i32>} : memref<2x8x16xf32, #tpu.memory_space<vmem>>, vector<2x8x16xf32>,
    %c0_32 = arith.constant 0 : index
    %c0_33 = arith.constant 0 : index
    %c0_34 = arith.constant 0 : index
    %46 = vector.load %arg10[%c0_32, %c0_33, %c0_34] : memref<2x8x1xf32, #tpu.memory_space<vmem>>, vector<2x8x1xf32>
    tpu.vector_store %arg10[%c0_32, %c0_33, %c0_34], %27 {strides = array<i32>} : memref<2x8x1xf32, #tpu.memory_space<vmem>>, vector<2x8x1xf32>,
    %c0_i32_35 = arith.constant 0 : i32
    %47 = arith.cmpi eq, %arg2, %c0_i32_35 : i32
    %48 = arith.extui %47 : i1 to i32
    %c0_i32_36 = arith.constant 0 : i32
    %49 = arith.cmpi ne, %48, %c0_i32_36 : i32
    scf.if %49 {
      %c0_37 = arith.constant 0 : index
      %c0_38 = arith.constant 0 : index
      %c0_39 = arith.constant 0 : index
      %50 = vector.load %arg9[%c0_37, %c0_38, %c0_39] : memref<2x8x16xf32, #tpu.memory_space<vmem>>, vector<2x8x16xf32>
      %c0_40 = arith.constant 0 : index
      %c0_41 = arith.constant 0 : index
      %c0_42 = arith.constant 0 : index
      %51 = vector.load %arg11[%c0_40, %c0_41, %c0_42] : memref<2x8x1xf32, #tpu.memory_space<vmem>>, vector<2x8x1xf32>
      %52 = tpu.reciprocal %51 {approx = true} : vector<2x8x1xf32> -> vector<2x8x1xf32>
      %53 = vector.broadcast %52 : vector<2x8x1xf32> to vector<2x8x16xf32>
      %54 = arith.mulf %50, %53 : vector<2x8x16xf32>
      %cst_43 = arith.constant 0.000000e+00 : f32
      %55 = vector.broadcast %cst_43 : f32 to vector<8x32xf32>
      %56 = vector.extract_strided_slice %54 {offsets = [0, 0, 0], sizes = [1, 8, 16], strides = [1, 1, 1]} : vector<2x8x16xf32> to vector<1x8x16xf32>
      %57 = vector.shape_cast %56 : vector<1x8x16xf32> to vector<8x16xf32>
      %58 = arith.truncf %57 : vector<8x16xf32> to vector<8x16xbf16>
      %c0_44 = arith.constant 0 : index
      %c0_45 = arith.constant 0 : index
      %c0_46 = arith.constant 0 : index
      %59 = vector.load %arg6[%c0_44, %c0_45, %c0_46] : memref<2x16x32xbf16, #tpu.memory_space<vmem>>, vector<1x16x32xbf16>
      %60 = vector.shape_cast %59 : vector<1x16x32xbf16> to vector<16x32xbf16>
      %cst_47 = arith.constant dense<0.000000e+00> : vector<8x32xf32>
      %61 = tpu.matmul %58, %60, %cst_47 {dimension_numbers = #tpu.dot_dimension_numbers<[1], [0], [0], [1], [0, 0, 1, 1], [], []>} : vector<8x16xbf16>, vector<16x32xbf16>, vector<8x32xf32> -> vector<8x32xf32>
      %62 = arith.addf %55, %61 : vector<8x32xf32>
      %63 = vector.extract_strided_slice %54 {offsets = [1, 0, 0], sizes = [1, 8, 16], strides = [1, 1, 1]} : vector<2x8x16xf32> to vector<1x8x16xf32>
      %64 = vector.shape_cast %63 : vector<1x8x16xf32> to vector<8x16xf32>
      %65 = arith.truncf %64 : vector<8x16xf32> to vector<8x16xbf16>
      %c1 = arith.constant 1 : index
      %c0_48 = arith.constant 0 : index
      %c0_49 = arith.constant 0 : index
      %66 = vector.load %arg6[%c1, %c0_48, %c0_49] : memref<2x16x32xbf16, #tpu.memory_space<vmem>>, vector<1x16x32xbf16>
      %67 = vector.shape_cast %66 : vector<1x16x32xbf16> to vector<16x32xbf16>
      %cst_50 = arith.constant dense<0.000000e+00> : vector<8x32xf32>
      %68 = tpu.matmul %65, %67, %cst_50 {dimension_numbers = #tpu.dot_dimension_numbers<[1], [0], [0], [1], [0, 0, 1, 1], [], []>} : vector<8x16xbf16>, vector<16x32xbf16>, vector<8x32xf32> -> vector<8x32xf32>
      %69 = arith.addf %62, %68 : vector<8x32xf32>
      %c0_51 = arith.constant 0 : index
      %c0_52 = arith.constant 0 : index
      %70 = vector.load %arg7[%c0_51, %c0_52] : memref<1x32xf32, #tpu.memory_space<vmem>>, vector<1x32xf32>
      %71 = vector.broadcast %70 : vector<1x32xf32> to vector<8x32xf32>
      %72 = arith.addf %69, %71 : vector<8x32xf32>
      %c0_53 = arith.constant 0 : index
      %c0_54 = arith.constant 0 : index
      %c0_55 = arith.constant 0 : index
      %73 = vector.load %arg8[%c0_53, %c0_54, %c0_55] : memref<1x8x32xf32, #tpu.memory_space<vmem>>, vector<1x8x32xf32>
      %74 = vector.shape_cast %73 : vector<1x8x32xf32> to vector<8x32xf32>
      %75 = vector.shape_cast %72 : vector<8x32xf32> to vector<1x8x32xf32>
      tpu.vector_store %arg8[%c0_53, %c0_54, %c0_55], %75 {strides = array<i32>} : memref<1x8x32xf32, #tpu.memory_space<vmem>>, vector<1x8x32xf32>,
    } else {
    }
    return
  }
  func.func @transform_0(%arg0: i32, %arg1: i32, %arg2: i32) -> (i32, i32, i32, i32) {
    %c0_i32 = arith.constant 0 : i32
    %c0_i32_0 = arith.constant 0 : i32
    %c0_i32_1 = arith.constant 0 : i32
    return %arg0, %c0_i32, %arg1, %c0_i32_0 : i32, i32, i32, i32
  }
  func.func @transform_1(%arg0: i32, %arg1: i32, %arg2: i32) -> (i32, i32, i32, i32) {
    %c0_i32 = arith.constant 0 : i32
    %c0_i32_0 = arith.constant 0 : i32
    %c0_i32_1 = arith.constant 0 : i32
    return %arg0, %c0_i32, %arg2, %c0_i32_0 : i32, i32, i32, i32
  }
  func.func @transform_2(%arg0: i32, %arg1: i32, %arg2: i32) -> (i32, i32, i32, i32) {
    %c0_i32 = arith.constant 0 : i32
    %c0_i32_0 = arith.constant 0 : i32
    %c0_i32_1 = arith.constant 0 : i32
    return %arg0, %c0_i32, %arg2, %c0_i32_0 : i32, i32, i32, i32
  }
  func.func @transform_3(%arg0: i32, %arg1: i32, %arg2: i32) -> (i32, i32, i32) {
    %c0_i32 = arith.constant 0 : i32
    %c0_i32_0 = arith.constant 0 : i32
    %c0_i32_1 = arith.constant 0 : i32
    %c0_i32_2 = arith.constant 0 : i32
    return %c0_i32, %c0_i32_0, %c0_i32_1 : i32, i32, i32
  }
  func.func @transform_4(%arg0: i32, %arg1: i32, %arg2: i32) -> (i32, i32) {
    %c0_i32 = arith.constant 0 : i32
    %c0_i32_0 = arith.constant 0 : i32
    %c0_i32_1 = arith.constant 0 : i32
    return %c0_i32, %c0_i32_0 : i32, i32
  }
  func.func @transform_5(%arg0: i32, %arg1: i32, %arg2: i32) -> (i32, i32, i32) {
    %c0_i32 = arith.constant 0 : i32
    %c0_i32_0 = arith.constant 0 : i32
    return %arg0, %arg1, %c0_i32 : i32, i32, i32
  }
}

</mosaic_0001>

<bundles_post_ra>
// kernel: tpu_custom_call.1
= control target key start
LH: loop header
LB: loop body
LE: loop exit
PB: predicated region body
PF: predicated region fallthrough
CT: control target
= control target key end

     0   :  { %s1758_s0 = inlined_call_operand.hbm [shape: bf16[2,2,8,16], index: 0, kind: input, shape index: {}]   ;;  %s1759_s1 = inlined_call_operand.hbm [shape: bf16[2,2,8,16], index: 1, kind: input, shape index: {}]   ;;  %s1760_s2 = inlined_call_operand.hbm [shape: bf16[2,2,8,16], index: 2, kind: input, shape index: {}]   ;;  %s1761_s3 = inlined_call_operand.hbm [shape: bf16[2,16,32], index: 3, kind: input, shape index: {}]   ;;  %s1762_s4 = inlined_call_operand.vmem [shape: f32[1,32], index: 4, kind: input, shape index: {}]   ;;  %s1763_s5 = inlined_call_operand.hbm [shape: f32[2,8,32], index: 5, kind: output, shape index: {}]  }
   0x1   :  { %1783 = sst [smem:[#allocation23_spill]] %s1758_s0 }
   0x2   :  { %1784 = sst [smem:[#allocation24_spill]] %s1759_s1 }
   0x3   :  { %10 = vsyncpa [#allocation6], 0 }
   0x4   :  { %12 = vsyncpa [#allocation6 + $0x1], 0 }
   0x5   :  { %13 = vsyncpa [#allocation9], 0 }
   0x6   :  { %15 = vsyncpa [#allocation9 + $0x1], 0 }
   0x7   :  { %16 = vsyncpa [#allocation12], 0 }
   0x8   :  { %17 = vsyncpa [#allocation7], 0 }
   0x9   :  { %19 = vsyncpa [#allocation7 + $0x1], 0  ;;  %s1387_s18 = smov 0   ;;  %s1389_s19 = smov 0  }
   0xa   :  { %s1391_s20 = smov 0   ;;  %s1393_s21 = smov 0  }
   0xb   :  { %s1395_s22 = smov 0   ;;  %s1397_s23 = smov 0  }
   0xc LB: > { %1785 = sst [smem:[#allocation18_spill]] %s1332_s20  ;;  %s44_s24 = sadd.s32 1, %s1340_s22  ;;  %s1344_s23 = sphi %s1397_s23, %s25_s23   ;;  %s1340_s22 = sphi %s1395_s22, %s1817_s22   ;;  %s1336_s21 = sphi %s1393_s21, %s1816_s21   ;;  %s1332_s20 = sphi %s1391_s20, %s1815_s20   ;;  %s1328_s19 = sphi %s1389_s19, %s1819_s19   ;;  %s1324_s18 = sphi %s1387_s18, %s1818_s18  }
   0xd   : > { %1786 = sst [smem:[#allocation19_spill]] %s1340_s22  ;;  %s53_s25 = sadd.s32 1, %s1332_s20 }
   0xe   : > { %1787 = sst [smem:[#allocation20_spill]] %s1344_s23  ;;  %p46_p0 = scmp.ge.s32.totalorder %s44_s24, 2 }
   0xf   : > { %p1764_p1 = scmp.ne.s32.totalorder %s1332_s20, %s1328_s19  ;;  %p61_p2 = scmp.eq.s32.totalorder %s1344_s23, 0 }
  0x10   : > { %s1821_s24 = smov (%p46_p0, %s44_s24), 0  ;;  %p1062_p6 = scmp.lt.s32.totalorder %s1344_s23, 2 }
  0x11   : > { %1788 = sst [smem:[#allocation21_spill]] %s1821_s24  ;;  %p62_p3 = por %p61_p2, %p1764_p1 }
  0x12   : > { %s48_s26 = ssub.s32 %s1340_s22, %s1821_s24  ;;  %s1769_s27 = sand.u32 1, %s1332_s20  }
  0x13   : > { %p51_p5 = scmp.eq.s32.totalorder %s48_s26, 0  ;;  %s1433_s28 = sshll.u32 %s1340_s22, 7 }
  0x14   : > { %s1440_s30 = sshll.u32 %s1769_s27, 3  ;;  %p1442_p7 = pnand %p1062_p6, %p62_p3 }
  0x15   : > { %s1436_s29 = scalar_select %p51_p5, %s1332_s20, %s53_s25  }
  0x16   : > { %s1790_s6 = scalar_select %p1442_p7, 1, 0 }
  0x17   : > { %1789 = sst [smem:[#allocation22_spill]] %s1436_s29  ;;  %s254_s7 = sand.u32 1, %s1344_s23  }
  0x18   : > { %s1791_s1 = sld [smem:[#allocation24_spill]]  ;;  %s258_s11 = scalar_lea.vmem [#allocation8], %s1440_s30 }
  0x19   : > { %s266_s12 = sshll.u32 %s258_s11, 4  ;;  %s1456_s13 = scalar_lea.sflag [#allocation9], %s254_s7  ;;  %s1454_s12 = int_to_ptr.vmem [resolvable:$true] %s266_s12 }
  0x1a   : > { %p1462_p9 = pneg %p1442_p7 }
  0x1c   : > { %s1792_s15 = scalar_select %p1462_p9, 1, 0 }
  0x1e   : > { %s1451_s10 = scalar_lea.hbm %s1791_s1, %s1433_s28  ;;  %s1141_s25 = scalar_lea.hbm %s1791_s1, 256 }
  0x1f   : > { %s1136_s14 = scalar_lea.hbm %s1451_s10, 128  ;;  %p1142_p12 = scmp.lt.u32.totalorder %s1451_s10, %s1791_s1 }
  0x20   : > { %p1137_p8 = scmp.ne.s32.totalorder %s1451_s10, %s1136_s14  ;;  %p1143_p13 = scmp.lt.u32.totalorder %s1141_s25, %s1136_s14 }
  0x21   : > { %p1145_p2 = scmp.lt.u32.totalorder %s1136_s14, %s1451_s10 }
  0x22   : > { %p1139_p10 = pnand %p1462_p9, %p1137_p8  ;;  %p1144_p0 = por %p1143_p13, %p1142_p12 }
  0x24   : > { %p1140_p11 = pneg %p1139_p10  ;;  %p1146_p3 = por %p1145_p2, %p1144_p0 }
  0x26   : > { %p1147_p5 = pnand %p1146_p3, %p1140_p11 }
  0x28   : > { %1150 = shalt.err (!%p1147_p5)
}
  0x29   : > { %s1151_s7 = scalar_lea.vmem %s1454_s12, 128  ;;  %s1346_s9 = smov [#allocation8]  }
  0x2a   : > { %p1152_p6 = scmp.ne.s32.totalorder %s1454_s12, %s1151_s7  ;;  %s1156_s11 = sshll.u32 %s1346_s9, 4  ;;  %s1157_s11 = int_to_ptr.vmem [resolvable:$false] %s1156_s11 }
  0x2b   : > { %s1158_s16 = scalar_lea.vmem %s1157_s11, 256  ;;  %p1159_p4 = scmp.lt.s32.totalorder %s1454_s12, %s1157_s11 }
  0x2c   : > { %p1154_p8 = pnand %p1152_p6, %p1462_p9  ;;  %p1160_p1 = scmp.lt.s32.totalorder %s1158_s16, %s1151_s7 }
  0x2e   : > { %p1155_p10 = pneg %p1154_p8  ;;  %p1161_p12 = por %p1160_p1, %p1159_p4 }
  0x30   : > { %p1162_p13 = pnand %p1161_p12, %p1155_p10 }
  0x32   : > { %1165 = shalt.err (!%p1162_p13)
}
  0x33   : > { %s1765_s14 = smov 64   ;;  %s1767_s17 = smov 4  }
  0x34   : > { %1053 = dma.hbm_to_vmem [thread:$0]  (!%p1442_p7), %s1451_s10, 128, %s1454_s12, %s1456_s13, %s1765_s14, %s1765_s14, %s1767_s17  }
  0x35   : > { %s1490_s25 = sadd.s32 4294967295, %s1344_s23   ;;  %s948_s26 = sadd.s32 4294967294, %s1344_s23  }
  0x36   : > { %p66_p1 = scmp.ne.s32.totalorder %s1328_s19, %s1324_s18  ;;  %p1774_p4 = scmp.eq.s32.totalorder %s1490_s25, 0 }
  0x37   : > { %p190_p11 = scmp.eq.s32.totalorder %s1490_s25, 1  ;;  %p196_p0 = scmp.eq.s32.totalorder %s948_s26, 1 }
  0x38   : > { %p949_p2 = scmp.ge.s32.totalorder %s1344_s23, 1  ;;  %p1500_p3 = por %p1774_p4, %p66_p1 }
  0x39   : > { %p1794_p5 = scmp.ne.s32.totalorder %s1332_s20, %s1328_s19  ;;  %p1511_p8 = por %p196_p0, %p66_p1 }
  0x3a   : > { %s1793_s8 = scalar_select %p1500_p3, 1, 0 }
  0x3b   : > { %p1507_p6 = por %p190_p11, %p1794_p5  ;;  %p203_p10 = scmp.lt.s32.totalorder %s1344_s23, 3 }
  0x3c   : > { %s1796_s12 = scalar_select %p1511_p8, 1, 0 }
  0x3d   : > { %s1795_s10 = scalar_select %p1507_p6, 1, 0 }
  0x3e   : > { %p1516_p12 = pnand %p949_p2, %p203_p10  ;;  %s1349_s9 = smov [#allocation11]  }
  0x3f   : > { %s215_s11 = sshll.u32 %s1349_s9, 4  ;;  %s1798_s0 = sld [smem:[#allocation23_spill]]  ;;  %s1520_s11 = int_to_ptr.vmem [resolvable:$true] %s215_s11 }
  0x40   : > { %s1797_s7 = scalar_select %p1516_p12, 1, 0 }
  0x41   : > { %p1043_p13 = pneg %p1516_p12  ;;  %s236_s17 = scalar_lea.vmem [#allocation5], %s1440_s30 }
  0x42   : > { %s244_s27 = sshll.u32 %s236_s17, 4  ;;  %s1800_s9 = sand.u32 1, %s1332_s20   ;;  %s1537_s27 = int_to_ptr.vmem [resolvable:$true] %s244_s27 }
  0x43   : > { %p1533_p1 = pnand %p1043_p13, %p1774_p4  ;;  %s1541_s24 = scalar_lea.sflag [#allocation6], %s1800_s9 }
  0x45   : > { %s1528_s14 = scalar_lea.hbm %s1798_s0, %s1433_s28  ;;  %s1171_s29 = scalar_lea.hbm %s1798_s0, 256 }
  0x46   : > { %s1799_s1 = scalar_select %p1533_p1, 1, 0 }
  0x47   : > { %s1166_s22 = scalar_lea.hbm %s1528_s14, 128  ;;  %p1172_p5 = scmp.lt.u32.totalorder %s1528_s14, %s1798_s0 }
  0x48   : > { %p1167_p11 = scmp.ne.s32.totalorder %s1528_s14, %s1166_s22  ;;  %p1173_p10 = scmp.lt.u32.totalorder %s1171_s29, %s1166_s22 }
  0x49   : > { %p1175_p4 = scmp.lt.u32.totalorder %s1166_s22, %s1528_s14 }
  0x4a   : > { %p1169_p0 = pnand %p1167_p11, %p1462_p9  ;;  %p1174_p13 = por %p1173_p10, %p1172_p5 }
  0x4c   : > { %p1170_p2 = pneg %p1169_p0  ;;  %p1176_p8 = por %p1175_p4, %p1174_p13 }
  0x4e   : > { %p1177_p6 = pnand %p1176_p8, %p1170_p2 }
  0x50   : > { %1180 = shalt.err (!%p1177_p6)
}
  0x51   : > { %s1181_s9 = scalar_lea.vmem %s1537_s27, 128  ;;  %s1350_s16 = smov [#allocation5]  }
  0x52   : > { %p1182_p11 = scmp.ne.s32.totalorder %s1537_s27, %s1181_s9  ;;  %s1186_s26 = sshll.u32 %s1350_s16, 4  ;;  %s1187_s26 = int_to_ptr.vmem [resolvable:$false] %s1186_s26 }
  0x53   : > { %s1188_s23 = scalar_lea.vmem %s1187_s26, 256  ;;  %p1189_p12 = scmp.lt.s32.totalorder %s1537_s27, %s1187_s26 }
  0x54   : > { %p1184_p0 = pnand %p1182_p11, %p1462_p9  ;;  %p1190_p1 = scmp.lt.s32.totalorder %s1188_s23, %s1181_s9 }
  0x56   : > { %p1185_p3 = pneg %p1184_p0  ;;  %p1191_p5 = por %p1190_p1, %p1189_p12 }
  0x58   : > { %p1192_p10 = pnand %p1191_p5, %p1185_p3 }
  0x5a   : > { %1195 = shalt.err (!%p1192_p10)
}
  0x5b   : > { %s1801_s22 = smov 4   ;;  %s1802_s29 = smov 64  }
  0x5c   : > { %1050 = dma.hbm_to_vmem [thread:$0]  (!%p1442_p7), %s1528_s14, 128, %s1537_s27, %s1541_s24, %s1802_s29, %s1802_s29, %s1801_s22  }
  0x5d   : > { %s1196_s16 = scalar_lea.hbm %s1761_s3, 256  ;;  %p1803_p3 = scmp.ne.s32.totalorder %s1799_s1, 0 }
  0x5e   : > { %p1197_p4 = scmp.ne.s32.totalorder %s1761_s3, %s1196_s16  ;;  %p1203_p1 = scmp.lt.u32.totalorder %s1196_s16, %s1761_s3 }
  0x5f   : > { %p1198_p6 = pneg %p1803_p3 }
  0x61   : > { %p1199_p8 = pnand %p1198_p6, %p1197_p4 }
  0x63   : > { %p1200_p12 = pneg %p1199_p8 }
  0x65   : > { %p1205_p2 = pnand %p1203_p1, %p1200_p12 }
  0x67   : > { %1208 = shalt.err (!%p1205_p2)
}
  0x68   : > { %s1209_s24 = scalar_lea.vmem %s1520_s11, 256  ;;  %p1217_p5 = scmp.lt.s32.totalorder %s1520_s11, %s1520_s11 }
  0x69   : > { %p1210_p13 = scmp.ne.s32.totalorder %s1520_s11, %s1209_s24  ;;  %p1218_p10 = scmp.lt.s32.totalorder %s1209_s24, %s1209_s24 }
  0x6b   : > { %p1212_p11 = pnand %p1210_p13, %p1198_p6  ;;  %p1219_p7 = por %p1218_p10, %p1217_p5 }
  0x6d   : > { %p1213_p0 = pneg %p1212_p11 }
  0x6f   : > { %p1220_p9 = pnand %p1219_p7, %p1213_p0 }
  0x71   : > { %1223 = shalt.err (!%p1220_p9)
}
  0x72   : > { %1046 = dma.hbm_to_vmem [thread:$0]  (!%p1803_p3), %s1761_s3, 256, %s1520_s11, [#allocation12], %s1802_s29, %s1802_s29, %s1801_s22  }
  0x73   : > { %s1596_s17 = scalar_lea.hbm %s1760_s2, %s1433_s28  ;;  %s280_s1 = scalar_lea.vmem [#allocation10], %s1440_s30 }
  0x74   : > { %s288_s16 = sshll.u32 %s280_s1, 4  ;;  %s1224_s26 = scalar_lea.hbm %s1596_s17, 128  ;;  %s1599_s16 = int_to_ptr.vmem [resolvable:$true] %s288_s16 }
  0x75   : > { %p1225_p7 = scmp.ne.s32.totalorder %s1596_s17, %s1224_s26  ;;  %p1804_p9 = scmp.ne.s32.totalorder %s1792_s15, 0 }
  0x76   : > { %s1229_s23 = scalar_lea.hbm %s1760_s2, 256  ;;  %p1230_p3 = scmp.lt.u32.totalorder %s1596_s17, %s1760_s2 }
  0x77   : > { %p1227_p4 = pnand %p1225_p7, %p1804_p9  ;;  %p1231_p8 = scmp.lt.u32.totalorder %s1229_s23, %s1224_s26 }
  0x78   : > { %p1233_p1 = scmp.lt.u32.totalorder %s1224_s26, %s1596_s17 }
  0x79   : > { %p1228_p6 = pneg %p1227_p4  ;;  %p1232_p12 = por %p1231_p8, %p1230_p3 }
  0x7b   : > { %p1234_p2 = por %p1233_p1, %p1232_p12 }
  0x7d   : > { %p1235_p13 = pnand %p1234_p2, %p1228_p6 }
  0x7f   : > { %1238 = shalt.err (!%p1235_p13)
}
  0x80   : > { %s1239_s30 = scalar_lea.vmem %s1599_s16, 128  ;;  %s1351_s0 = smov [#allocation10]  }
  0x81   : > { %p1240_p11 = scmp.ne.s32.totalorder %s1599_s16, %s1239_s30  ;;  %s1244_s20 = sshll.u32 %s1351_s0, 4  ;;  %s1245_s20 = int_to_ptr.vmem [resolvable:$false] %s1244_s20 }
  0x82   : > { %s1246_s27 = scalar_lea.vmem %s1245_s20, 256  ;;  %p1247_p10 = scmp.lt.s32.totalorder %s1599_s16, %s1245_s20 }
  0x83   : > { %p1242_p0 = pnand %p1240_p11, %p1804_p9  ;;  %p1248_p7 = scmp.lt.s32.totalorder %s1246_s27, %s1239_s30 }
  0x85   : > { %p1243_p5 = pneg %p1242_p0  ;;  %p1249_p4 = por %p1248_p7, %p1247_p10 }
  0x87   : > { %p1250_p3 = pnand %p1249_p4, %p1243_p5 }
  0x89   : > { %1253 = shalt.err (!%p1250_p3)
}
  0x8a   : > { %p1805_p6 = scmp.ne.s32.totalorder %s1790_s6, 0  ;;  %p1806_p9 = scmp.ne.s32.totalorder %s1797_s7, 0 }
  0x8b   : > { %s1629_s15 = sand.u32 (!%p1806_p9), 1, %s1328_s19   ;;  %p1807_p8 = scmp.ne.s32.totalorder (!%p1806_p9), %s1793_s8, 0 }
  0x8c   : > { %1056 = dma.hbm_to_vmem [thread:$0]  (!%p1805_p6), %s1596_s17, 128, %s1599_s16, %s1456_s13, %s1802_s29, %s1802_s29, %s1801_s22  }
  0x8d   : > { %300 = sbr.rel (%p1806_p9) target bundleno = 1196 (0x4ac), region = 40  ;;  %s1632_s14 = sshll.u32 (!%p1806_p9), %s1629_s15, 3 }
  0x8e   : > { %s303_s6 = scalar_lea.sflag (!%p1806_p9), [#allocation6], %s1629_s15  ;;  %s306_s1 = scalar_lea.vmem (!%p1806_p9), [#allocation5], %s1632_s14 }
  0x94   : > { %1307 = dma.done.wait (%p1807_p8), %s303_s6, 128  }
  0x95   : > { %1309 = vsyncadd (%p1807_p8), %s303_s6, 4294967168  ;;  %s311_s13 = sand.u32 1, %s1490_s25   ;;  %s315_s22 = scalar_lea.vmem [#allocation8], %s1632_s14 }
  0x96   : > { %s312_s7 = scalar_lea.sflag [#allocation9], %s311_s13 }
  0x97   : > { %1311 = dma.done.wait (%p1807_p8), %s312_s7, 256  }
  0x98   : > { %1313 = vsyncadd (%p1807_p8), %s312_s7, 4294967040  ;;  %s324_s29 = scalar_lea.vmem [#allocation10], %s1632_s14  ;;  %p1808_p12 = scmp.eq.s32.totalorder %s1490_s25, 0 }
  0x9a   : > { %1315 = dma.done.wait (%p1808_p12), [#allocation12], 256   ;;  %p1809_p1 = pmov %p1808_p12 }
  0x9b   : > { %vm375_vm0 = vcmask 130048   ;;  %v1352_v0 = vmov 0.0   ;;  %vm1353_vm1 = vmmov 0   ;;  %v380_v1 = vld [vmem:[%s315_s22] sm:$0xf]  ;;  %vm370_vm2 = vcmask 7168  }
  0x9c   : > { %1317 = vsyncadd (%p1809_p1), [#allocation12], 4294967040  ;;  %995 = vmatprep.subr.bf16.mxu0 %v1352_v0  ;;  %376 = vst.msk [vmem:[#allocation2] sm:$0xff] %vm375_vm0, %v1352_v0  ;;  %1001 = vmatprep.subr.bf16.mxu1 %v1352_v0  ;;  %v381_v2 = vld [vmem:[%s315_s22 + $0x4] sm:$0xf]  ;;  %v389_v3 = vsel %vm375_vm0, %v380_v1, 0  ;;  %v479_v8 = vlaneseq }
  0x9d   : > { %377 = vst.msk [vmem:[#allocation2 + $0x8] sm:$0xff] %vm375_vm0, %v1352_v0  ;;  %997 = vmatprep.mubr.msk.bf16.mxu0 %vm1353_vm1, %v1352_v0  ;;  %1003 = vmatprep.mubr.msk.bf16.mxu1 %vm1353_vm1, %v1352_v0  ;;  %v435_v4 = vsel %vm375_vm0, %v381_v2, 0  ;;  %v378_v5 = vld [vmem:[%s306_s1] sm:$0xf]  ;;  %v379_v6 = vld [vmem:[%s306_s1 + $0x4] sm:$0xf] }
  0x9e   : > { %996 = vmatpush3.bf16.xpose.msra.mxu0 %v389_v3  ;;  %1002 = vmatpush3.bf16.xpose.msra.mxu1 %v435_v4  ;;  %v1354_v7 = vmov -inf   ;;  %373 = vst.msk [vmem:[#allocation4] sm:$0xff] %vm370_vm2, %v1352_v0  ;;  %374 = vst.msk [vmem:[#allocation4 + $0x8] sm:$0xff] %vm370_vm2, %v1352_v0  ;;  %v480_v9 = vshrl.u32 %v479_v8, 7  ;;  %v484_v10 = vand.u32 127, %v479_v8  ;;  %vm494_vm4 = vcmask 64512  }
  0x9f   : > { %1007 = vmatprep.subr.bf16.mxu0 %v1352_v0  ;;  %1013 = vmatprep.subr.bf16.mxu1 %v1352_v0  ;;  %371 = vst.msk [vmem:[#allocation3] sm:$0xff] %vm370_vm2, %v1354_v7  ;;  %372 = vst.msk [vmem:[#allocation3 + $0x8] sm:$0xff] %vm370_vm2, %v1354_v7  ;;  %v1355_v23 = vmov 0   ;;  %v382_v32 = vld [vmem:[%s324_s29] sm:$0xf]  ;;  %vm559_vm5 = vcmask 1043456  }
  0xa0   : > { %vm487_vm3 = vcmp.ge.s32.totalorder %v480_v9, %v484_v10  ;;  %1120 = vset.pattern.permute.xlu1 %v1355_v23  ;;  %1121 = vset.pattern.permute.xlu0 %v1355_v23  ;;  %v561_v33 = vsel %vm559_vm5, %v382_v32, 0  ;;  %v383_v34 = vld [vmem:[%s324_s29 + $0x4] sm:$0xf]  ;;  %v1123_v63 = vld [vmem:[#allocation11] sm:$0xff]   ;;  %s977_s17 = sshll.u32 %s1336_s21, 7  ;;  %s364_s16 = scalar_lea.vmem [#allocation13], %s1632_s14 }
  0xa1   : > { %v607_v35 = vsel %vm559_vm5, %v383_v34, 0  ;;  %s806_s26 = sshll.u32 %s364_s16, 4  ;;  %vm789_vm6 = vcmask 261120   ;;  %s1709_s23 = scalar_lea.hbm %s1763_s5, %s977_s17  ;;  %s1711_s26 = int_to_ptr.vmem [resolvable:$true] %s806_s26 }
  0xa2   : > { %s792_s21 = scalar_lea.sflag [#allocation7], %s1629_s15  ;;  %s1254_s24 = scalar_lea.vmem %s1711_s26, 128 }
  0xa3   : > { %v540_v2 = vld [vmem:[#allocation2] sm:$0xff]  ;;  %p1255_p2 = scmp.ne.s32.totalorder %s1711_s26, %s1254_s24  ;;  %p1810_p13 = scmp.ne.s32.totalorder %s1795_s10, 0 }
  0xa4   : > { %s1356_s28 = smov [#allocation13]  }
  0xa5   : > { %998 = vmatmul.mubr.msk.bf16.vlgmr.msra.gmra.mrb[0].mxu0 %vm375_vm0, %v378_v5  ;;  %1004 = vmatmul.mubr.msk.bf16.vlgmr.msra.gmra.mrb[0].mxu1 %vm375_vm0, %v379_v6  ;;  %v525_v52 = vld [vmem:[#allocation4] sm:$0xff]  ;;  %v526_v55 = vld [vmem:[#allocation4 + $0x8] sm:$0xff]  ;;  %p1256_p11 = pnand %p1255_p2, %p1810_p13  ;;  %s1258_s30 = sshll.u32 %s1356_s28, 4  ;;  %s1259_s30 = int_to_ptr.vmem [resolvable:$false] %s1258_s30 }
  0xa6   : > { %1009 = vmatprep.mubr.msk.bf16.mxu0 %vm1353_vm1, %v1352_v0  ;;  %1015 = vmatprep.mubr.msk.bf16.mxu1 %vm1353_vm1, %v1352_v0  ;;  %v492_v24 = vld [vmem:[#allocation3] sm:$0xff]  ;;  %v493_v27 = vld [vmem:[#allocation3 + $0x8] sm:$0xff]  ;;  %v541_v5 = vld [vmem:[#allocation2 + $0x8] sm:$0xff]  ;;  %s1260_s0 = scalar_lea.vmem %s1259_s30, 256  ;;  %p1261_p5 = scmp.lt.s32.totalorder %s1711_s26, %s1259_s30 }
  0xa7   : > { %1008 = vmatpush3.bf16.msra.mxu0 %v561_v33  ;;  %1014 = vmatpush3.bf16.msra.mxu1 %v607_v35  ;;  %p1257_p0 = pneg %p1256_p11  ;;  %p1262_p10 = scmp.lt.s32.totalorder %s1260_s0, %s1254_s24 }
  0xa8   : > { %1019 = vmatprep.subr.bf16.mxu0 %v1352_v0  ;;  %1025 = vmatprep.subr.bf16.mxu1 %v1352_v0 }
  0xa9   : > { %p1263_p7 = por %p1262_p10, %p1261_p5 }
  0xab   : > { %p1264_p4 = pnand %p1263_p7, %p1257_p0 }
 0x178   : > { %v425_v11 = vpop.f32.mrb[0].mxu0  ;;  %v471_v12 = vpop.f32.mrb[0].mxu1 }
 0x179   : > { %v490_v13 = vsel %vm487_vm3, %v425_v11, -1e+20  ;;  %v999_v14 = vpop.f32.mrb[1].mxu0  ;;  %v491_v15 = vsel %vm487_vm3, %v471_v12, -1e+20  ;;  %v1005_v16 = vpop.f32.mrb[1].mxu1 }
 0x17a   : > { %v428_v17 = vpop.f32.mrb[2].mxu0  ;;  %v474_v18 = vpop.f32.mrb[2].mxu1  ;;  %v495_v19 = vsel %vm494_vm4, %v490_v13, -inf  ;;  %v498_v22 = vsel %vm494_vm4, %v491_v15, -inf }
 0x17b   : > { %496 = vmax.xlane.f32.xlu0 %v495_v19  ;;  %v1000_v20 = vpop.f32.mrb[3].mxu0  ;;  %v1006_v21 = vpop.f32.mrb[3].mxu1 }
 0x17f   : > { %499 = vmax.xlane.f32.xlu0 %v498_v22 }
 0x208   : > { %v497_v25 = vpop.xlane.xlu0 %496 }
 0x209   : > { %v501_v26 = vmax.f32 %v492_v24, %v497_v25 }
 0x20b   : > { %v503_v28 = vsub.f32 %v492_v24, %v501_v26  ;;  %653 = vst.msk [vmem:[#allocation3] sm:$0xff] %vm370_vm2, %v501_v26  ;;  %511 = vperm.xlu1 %1120, %v501_v26  }
 0x20c   : > { %v500_v29 = vpop.xlane.xlu0 %499 }
 0x20d   : > { %v502_v30 = vmax.f32 %v493_v27, %v500_v29  ;;  %v505_v49 = vmul.f32 1.442695, %v503_v28 }
 0x20f   : > { %v504_v31 = vsub.f32 %v493_v27, %v502_v30  ;;  %654 = vst.msk [vmem:[#allocation3 + $0x8] sm:$0xff] %vm370_vm2, %v502_v30  ;;  %516 = vperm.xlu1 %1120, %v502_v30  }
 0x211   : > { %v507_v48 = vmul.f32 1.442695, %v504_v31  ;;  %v975_v31 = vld [vmem:[%s1762_s4] ss:$0 sm:$0xff] }
 0x28a   : > { %v512_v36 = vpop.permute.xlu1 %511 }
 0x28b   : > { %v519_v37 = vsub.f32 %v490_v13, %v512_v36 }
 0x28d   : > { %v521_v38 = vmul.f32 1.442695, %v519_v37 }
 0x28e   : > { %v517_v39 = vpop.permute.xlu1 %516 }
 0x28f   : > { %1124 = vpow2.f32 %v521_v38  ;;  %v520_v40 = vsub.f32 %v491_v15, %v517_v39 }
 0x291   : > { %v523_v41 = vmul.f32 1.442695, %v520_v40 }
 0x293   : > { %1126 = vpow2.f32 %v523_v41 }
 0x294   : > { %1128 = vpow2.f32 %v507_v48 }
 0x295   : > { %1130 = vpow2.f32 %v505_v49 }
 0x299   : > { %v1125_v42 = vpop.eup %1124 }
 0x29a   : > { %v529_v43 = vsel %vm494_vm4, %v1125_v42, 0.0  ;;  %v554_v44 = vpack.c.bf16 %v1125_v42, %v1125_v42 }
 0x29b   : > { %530 = vadd.xlane.f32.xlu0 %v529_v43 }
 0x29c   : > { %1010 = vmatmul.mubr.msk.bf16.vlgmr.msra.gmra.mrb[4].mxu0 %vm494_vm4, %v554_v44 }
 0x29d   : > { %v1127_v45 = vpop.eup %1126  ;;  %1021 = vmatprep.mubr.msk.bf16.mxu0 %vm1353_vm1, %v1352_v0 }
 0x29e   : > { %v532_v46 = vsel %vm494_vm4, %v1127_v45, 0.0  ;;  %v555_v47 = vpack.c.bf16 %v1127_v45, %v1127_v45  ;;  %v1129_v50 = vpop.eup %1128 }
 0x29f   : > { %533 = vadd.xlane.f32.xlu1 %v532_v46  ;;  %v1131_v51 = vpop.eup %1130  ;;  %v528_v57 = vmul.f32 %v1129_v50, %v526_v55 }
 0x2a0   : > { %1016 = vmatmul.mubr.msk.bf16.vlgmr.msra.gmra.mrb[4].mxu1 %vm494_vm4, %v555_v47  ;;  %v527_v53 = vmul.f32 %v1131_v51, %v525_v52 }
 0x2a1   : > { %1027 = vmatprep.mubr.msk.bf16.mxu1 %vm1353_vm1, %v1352_v0  ;;  %1026 = vmatpush3.bf16.msra.mxu1 %v1123_v63  ;;  %v1122_v0 = vld [vmem:[#allocation11 + $0x8] sm:$0xff]  }
 0x2a2   : > { %1020 = vmatpush3.bf16.msra.mxu0 %v1122_v0 }
 0x2b0   : > { %549 = vperm.xlu1 %1120, %v1129_v50  }
 0x2b1   : > { %544 = vperm.xlu0 %1121, %v1131_v51  }
 0x328   : > { %v531_v54 = vpop.xlane.xlu0 %530 }
 0x329   : > { %v535_v56 = vadd.f32 %v531_v54, %v527_v53 }
 0x32b   : > { %538 = vst.msk [vmem:[#allocation4] sm:$0xff] %vm370_vm2, %v535_v56 }
 0x32c   : > { %v534_v58 = vpop.xlane.xlu1 %533 }
 0x32d   : > { %v536_v59 = vadd.f32 %v534_v58, %v528_v57 }
 0x32f   : > { %539 = vst.msk [vmem:[#allocation4 + $0x8] sm:$0xff] %vm370_vm2, %v536_v59 }
 0x330   : > { %v545_v3 = vpop.permute.xlu0 %544  ;;  %v550_v6 = vpop.permute.xlu1 %549 }
 0x331   : > { %v552_v4 = vmul.f32 %v545_v3, %v540_v2  ;;  %v553_v11 = vmul.f32 %v550_v6, %v541_v5 }
 0x332   : > { %v660_v60 = vld [vmem:[#allocation4] sm:$0xff] }
 0x333   : > { %1132 = vrcp.f32 %v660_v60 }
 0x336   : > { %v661_v61 = vld [vmem:[#allocation4 + $0x8] sm:$0xff] }
 0x337   : > { %1134 = vrcp.f32 %v661_v61 }
 0x33d   : > { %v1133_v62 = vpop.eup %1132 }
 0x33e   : > { %666 = vperm.xlu0 %1121, %v1133_v62  }
 0x341   : > { %v1135_v1 = vpop.eup %1134 }
 0x342   : > { %671 = vperm.xlu0 %1121, %v1135_v1  }
 0x36f   : > { %v597_v7 = vpop.f32.mrb[4].mxu0 }
 0x370   : > { %v649_v8 = vadd.f32 %v597_v7, %v552_v4  ;;  %v1011_v9 = vpop.f32.mrb[5].mxu0 }
 0x371   : > { %v600_v10 = vpop.f32.mrb[6].mxu0 }
 0x372   : > { %651 = vst.msk [vmem:[#allocation2] sm:$0xff] %vm375_vm0, %v649_v8  ;;  %v1012_v12 = vpop.f32.mrb[7].mxu0 }
 0x373   : > { %v643_v13 = vpop.f32.mrb[4].mxu1 }
 0x374   : > { %v650_v14 = vadd.f32 %v643_v13, %v553_v11  ;;  %v1017_v15 = vpop.f32.mrb[5].mxu1 }
 0x375   : > { %v646_v16 = vpop.f32.mrb[6].mxu1 }
 0x376   : > { %652 = vst.msk [vmem:[#allocation2 + $0x8] sm:$0xff] %vm375_vm0, %v650_v14  ;;  %v1018_v17 = vpop.f32.mrb[7].mxu1 }
 0x379   : > { %v658_v18 = vld [vmem:[#allocation2] sm:$0xff] }
 0x37d   : > { %v659_v22 = vld [vmem:[#allocation2 + $0x8] sm:$0xff] }
 0x3bd   : > { %v667_v19 = vpop.permute.xlu0 %666 }
 0x3be   : > { %v674_v20 = vmul.f32 %v667_v19, %v658_v18 }
 0x3c0   : > { %v676_v21 = vpack.c.bf16 %v674_v20, %v674_v20 }
 0x3c1   : > { %v672_v23 = vpop.permute.xlu0 %671 }
 0x3c2   : > { %v675_v24 = vmul.f32 %v672_v23, %v659_v22  ;;  %1028 = vmatmul.mubr.msk.bf16.vlgmr.msra.gmra.mrb[8].mxu1 %vm375_vm0, %v676_v21 }
 0x3c4   : > { %v679_v25 = vpack.c.bf16 %v675_v24, %v675_v24 }
 0x3c6   : > { %1022 = vmatmul.mubr.msk.bf16.vlgmr.msra.gmra.mrb[8].mxu0 %vm375_vm0, %v679_v25 }
 0x495   : > { %v775_v26 = vpop.f32.mrb[8].mxu1 }
 0x496   : > { %v1029_v27 = vpop.f32.mrb[9].mxu1 }
 0x497   : > { %v778_v28 = vpop.f32.mrb[10].mxu1 }
 0x498   : > { %v1030_v29 = vpop.f32.mrb[11].mxu1 }
 0x499   : > { %v726_v30 = vpop.f32.mrb[8].mxu0 }
 0x49a   : > { %v776_v32 = vadd.f32 %v775_v26, %v726_v30  ;;  %v1023_v33 = vpop.f32.mrb[9].mxu0 }
 0x49b   : > { %v729_v34 = vpop.f32.mrb[10].mxu0 }
 0x49c   : > { %v788_v35 = vadd.f32 %v975_v31, %v776_v32  ;;  %v1024_v36 = vpop.f32.mrb[11].mxu0 }
 0x49e   : > { %790 = vst.msk [vmem:[%s364_s16] sm:$0xff] %vm789_vm6, %v788_v35 }
 0x49f   : > { %1267 = shalt.err (!%p1264_p4)
}
 0x4a0   : > { %s1268_s20 = scalar_lea.hbm %s1709_s23, 128  ;;  %s1272_s14 = scalar_lea.hbm %s1763_s5, 256 }
 0x4a1   : > { %p1269_p3 = scmp.ne.s32.totalorder %s1709_s23, %s1268_s20  ;;  %p1273_p8 = scmp.lt.u32.totalorder %s1709_s23, %s1763_s5 }
 0x4a2   : > { %p1274_p12 = scmp.lt.u32.totalorder %s1272_s14, %s1268_s20  ;;  %p1276_p2 = scmp.lt.u32.totalorder %s1268_s20, %s1709_s23 }
 0x4a3   : > { %p1270_p6 = pnand %p1269_p3, %p1810_p13 }
 0x4a4   : > { %p1275_p1 = por %p1274_p12, %p1273_p8 }
 0x4a5   : > { %p1271_p9 = pneg %p1270_p6 }
 0x4a6   : > { %p1277_p11 = por %p1276_p2, %p1275_p1 }
 0x4a8   : > { %p1278_p0 = pnand %p1277_p11, %p1271_p9 }
 0x4aa   : > { %1281 = shalt.err (!%p1278_p0)
}
 0x4ab   : > { %1041 = dma.vmem_to_hbm [thread:$0]  (%p1810_p13), %s1711_s26, 128, %s1709_s23, %s792_s21  }
 0x4ac PF: > { %s1811_s13 = sld [smem:[#allocation20_spill]]  ;;  %s818_s7 = sand.u32 1, %s1324_s18  }
 0x4ad   : > { %p1812_p5 = scmp.ne.s32.totalorder %s1796_s12, 0  ;;  %s819_s22 = scalar_lea.sflag [#allocation7], %s818_s7 }
 0x4b2   : > { %p1813_p10 = scmp.ge.s32.totalorder %s1811_s13, 2 }
 0x4b4   : > { %p1058_p7 = pnand %p1813_p10, %p1812_p5 }
 0x4b6   : > { %1319 = dma.done.wait (!%p1058_p7), %s819_s22, 128  }
 0x4b7   : > { %1321 = vsyncadd (!%p1058_p7), %s819_s22, 4294967168  ;;  %s25_s23 = sadd.s32 1, %s1811_s13   ;;  %s1814_s29 = sld [smem:[#allocation18_spill]] }
 0x4b8   : > { %p22_p4 = scmp.ge.s32.totalorder %s25_s23, 4   ;;  %s1815_s20 = sld [smem:[#allocation22_spill]] }
 0x4b9   : > { %s1816_s21 = sld [smem:[#allocation19_spill]]  ;;  %s1817_s22 = sld [smem:[#allocation21_spill]] }
 0x4ba   : > { %s1818_s18 = smov %s1328_s19  ;;  %24 = sbr.rel (!%p22_p4) target bundleno = 12 (0xc), region = 122 }
 0x4bd   : > { %s1819_s19 = smov %s1814_s29 }
 0x4c1   :  { %824 = vsyncpa [#allocation6], 1 }
 0x4c2   :  { %826 = vsyncpa [#allocation6 + $0x1], 1 }
 0x4c3   :  { %827 = vsyncpa [#allocation9], 1 }
 0x4c4   :  { %829 = vsyncpa [#allocation9 + $0x1], 1 }
 0x4c5   :  { %830 = vsyncpa [#allocation12], 1 }
 0x4c6   :  { %831 = vsyncpa [#allocation7], 1 }
 0x4c7   :  { %833 = vsyncpa [#allocation7 + $0x1], 1 }

</bundles_post_ra>
